<compile_context>
chip_gen: v7x
topology: tpu7x:2x2x1
jax: 0.10.0
libtpu: 0.0.40
codegen_flags: <defaults>
</compile_context>

<pallas_src>
import functools

import jax
import jax.numpy as jnp
from jax import lax
from jax.experimental import pallas as pl
from jax.experimental.pallas import tpu as pltpu


def _l12_partial_kernel(x_ref, y_ref, seg_ref, o_ref, *, phys_rows, row_tile,
                        inner):
    p = pl.program_id(0)          # parallel partition (both TCs on v7x)
    i = pl.program_id(1)          # sequential tiles within the partition

    # Zero this partition's resident accumulator on its first step.
    @pl.when(i == 0)
    def _init():
        o_ref[...] = jnp.zeros_like(o_ref)

    diff = x_ref[...].astype(jnp.float32) - y_ref[...].astype(jnp.float32)
    sq = diff * diff                                         # (row_tile, f)

    # Segmented per-logical-row sum of squares via a resident 0/1 segment
    # matrix on the MXU (free slots in this memory-bound kernel).  Split sq
    # into an exactly representable bf16 "hi" part plus residual "lo" so the
    # two native bf16 matmuls (f32 accumulation) keep ~f32 accuracy.
    sq_hi = sq.astype(jnp.bfloat16)
    sq_lo = (sq - sq_hi.astype(jnp.float32)).astype(jnp.bfloat16)
    seg = seg_ref[...]                                       # (f, 128) bf16
    row_sq = (jnp.dot(sq_hi, seg, preferred_element_type=jnp.float32)
              + jnp.dot(sq_lo, seg, preferred_element_type=jnp.float32))
    # row_sq[r, s] = sum of squares for logical row (tile row r, slot s);
    # columns >= pack are exactly zero, so sqrt/sum ignore them for free.
    norms = jnp.sqrt(row_sq)                                 # (row_tile, 128)

    t = p * inner + i             # unclamped global tile index
    tile_start = t * row_tile

    @pl.when(tile_start + row_tile <= phys_rows)
    def _full_tile():             # steady state: no masking needed
        o_ref[...] += jnp.sum(norms)

    @pl.when(tile_start + row_tile > phys_rows)
    def _edge_tile():             # boundary tile / clamped duplicate tiles
        r = lax.broadcasted_iota(jnp.int32, norms.shape, 0)
        valid = (tile_start + r) < phys_rows                 # per physical row
        o_ref[...] += jnp.sum(jnp.where(valid, norms, 0.0))


def l12_loss(x, y, *, target_tile_bytes=2 * 1024 * 1024):
    assert x.shape == y.shape
    assert x.ndim == 3
    n, v, d = x.shape
    rows = n * v
    itemsize = jnp.dtype(x.dtype).itemsize

    # Lane-dense packing: fold `pack` logical rows into each 128-lane physical
    # row when D divides 128 (and rows allow it) so all lanes carry data.
    if d < 128 and 128 % d == 0 and rows % (128 // d) == 0:
        pack = 128 // d
    else:
        pack = 1
    f = pack * d
    phys_rows = rows // pack

    x2 = x.reshape(phys_rows, f)
    y2 = y.reshape(phys_rows, f)

    # Segment matrix: seg[l, s] = 1 iff lane l belongs to logical-row slot s.
    # Built once on the host side; resident in VMEM for the whole kernel.
    lane = jnp.arange(f, dtype=jnp.int32)[:, None]
    col = jnp.arange(128, dtype=jnp.int32)[None, :]
    seg = (lane // d == col).astype(jnp.bfloat16)            # (f, 128)

    # ~2 MiB per input block; 2 inputs x 2 buffers stays well inside VMEM on
    # all generations (incl. v7x's smaller VMEM).
    # NOTE: for extremely large D (>~500K f32 per row) the feature dim itself
    # would also need tiling; not needed for realistic L12Loss shapes.
    row_tile = max(8, (target_tile_bytes // (f * itemsize)) // 8 * 8)
    if phys_rows <= row_tile:
        row_tile = phys_rows                 # single block over all rows
    n_tiles = pl.cdiv(phys_rows, row_tile)

    # Outer parallel axis with per-partition partial sums (uses both v7x TCs;
    # neutral on single-TC v5e/v6e).
    num_parts = 2 if n_tiles >= 2 else 1
    inner = pl.cdiv(n_tiles, num_parts)

    def in_map(p, i):
        # Clamp so duplicated trailing steps re-read the last valid block;
        # their contribution is masked to zero in the kernel.
        return (jnp.minimum(p * inner + i, n_tiles - 1), 0)

    kernel = functools.partial(
        _l12_partial_kernel,
        phys_rows=phys_rows, row_tile=row_tile, inner=inner)

    partials = pl.pallas_call(
        kernel,
        out_shape=jax.ShapeDtypeStruct((num_parts, 1, 1), jnp.float32),
        grid_spec=pltpu.PrefetchScalarGridSpec(
            num_scalar_prefetch=0,
            grid=(num_parts, inner),
            in_specs=[
                pl.BlockSpec((row_tile, f), in_map),
                pl.BlockSpec((row_tile, f), in_map),
                pl.BlockSpec((f, 128), lambda p, i: (0, 0)),  # resident seg
            ],
            out_specs=pl.BlockSpec((1, 1, 1), lambda p, i: (p, 0, 0)),
        ),
        compiler_params=pltpu.CompilerParams(
            dimension_semantics=("parallel", "arbitrary"),
            vmem_limit_bytes=32 * 1024 * 1024,
        ),
        cost_estimate=pl.CostEstimate(
            flops=3 * rows * d,
            transcendentals=rows,
            bytes_accessed=int(2 * rows * d * itemsize),
        ),
    )(x2, y2, seg)

    # Glue: combine per-partition partials and apply the mean outside.
    return (jnp.sum(partials) / (n * v)).astype(x.dtype)


if __name__ == "__main__":
    def ref_l12(x, y):
        n_, v_, _ = x.shape
        return jnp.sum(jnp.linalg.norm(
            x.astype(jnp.float32) - y.astype(jnp.float32), axis=-1)) / (n_ * v_)

    key = jax.random.PRNGKey(0)

    cases = [
        (2, 100, 32),    # packed lanes (pack=4), single block
        (4, 5000, 32),   # packed, multi-tile, parallel partitions + edge mask
        (2, 70, 48),     # unpacked fallback (48 does not divide 128)
    ]
    for (n_, v_, d_) in cases:
        key, kx, ky = jax.random.split(key, 3)
        x = jax.random.normal(kx, (n_, v_, d_), dtype=jnp.float32)
        y = jax.random.normal(ky, (n_, v_, d_), dtype=jnp.float32)

        out = jax.block_until_ready(l12_loss(x, y))
        ref = ref_l12(x, y)
        assert jnp.allclose(out, ref, rtol=2e-5, atol=1e-5), (n_, v_, d_, out, ref)

    print("KERNEL_OK")
</pallas_src>

<mosaic_0001>
module attributes {stable_mosaic.version = 11 : i64} {
  func.func @_l12_partial_kernel(%arg0: i32, %arg1: i32, %arg2: memref<50x128xf32, #tpu.memory_space<vmem>>, %arg3: memref<50x128xf32, #tpu.memory_space<vmem>>, %arg4: memref<128x128xbf16, #tpu.memory_space<vmem>>, %arg5: memref<1x1x1xf32, #tpu.memory_space<vmem>>) attributes {dimension_semantics = [#tpu.dimension_semantics<parallel>, #tpu.dimension_semantics<arbitrary>], iteration_bounds = array<i64: 1, 1>, scalar_prefetch = 0 : i64, scratch_operands = 0 : i64, tpu.core_type = #tpu.core_type<tc>, window_params = [{transform_indices = @transform_0, window_bounds = array<i64: 50, 128>}, {transform_indices = @transform_1, window_bounds = array<i64: 50, 128>}, {pipeline_mode = #tpu.pipeline_mode<synchronous>, transform_indices = @transform_2, window_bounds = array<i64: 128, 128>}, {transform_indices = @transform_3, window_bounds = array<i64: 1, 1, 1>}]} {
    %c0_i32 = arith.constant 0 : i32
    %0 = arith.cmpi eq, %arg1, %c0_i32 : i32
    %1 = arith.extui %0 : i1 to i32
    %c0_i32_0 = arith.constant 0 : i32
    %2 = arith.cmpi ne, %1, %c0_i32_0 : i32
    scf.if %2 {
      %cst_13 = arith.constant 0.000000e+00 : f32
      %27 = vector.broadcast %cst_13 : f32 to vector<1x1x1xf32>
      %c0_14 = arith.constant 0 : index
      %c0_15 = arith.constant 0 : index
      %c0_16 = arith.constant 0 : index
      %28 = vector.load %arg5[%c0_14, %c0_15, %c0_16] : memref<1x1x1xf32, #tpu.memory_space<vmem>>, vector<1x1x1xf32>
      tpu.vector_store %arg5[%c0_14, %c0_15, %c0_16], %27 {strides = array<i32>} : memref<1x1x1xf32, #tpu.memory_space<vmem>>, vector<1x1x1xf32>,
    } else {
    }
    %c0 = arith.constant 0 : index
    %c0_1 = arith.constant 0 : index
    %3 = vector.load %arg2[%c0, %c0_1] : memref<50x128xf32, #tpu.memory_space<vmem>>, vector<50x128xf32>
    %c0_2 = arith.constant 0 : index
    %c0_3 = arith.constant 0 : index
    %4 = vector.load %arg3[%c0_2, %c0_3] : memref<50x128xf32, #tpu.memory_space<vmem>>, vector<50x128xf32>
    %5 = arith.subf %3, %4 : vector<50x128xf32>
    %6 = arith.mulf %5, %5 : vector<50x128xf32>
    %7 = arith.truncf %6 : vector<50x128xf32> to vector<50x128xbf16>
    %8 = arith.extf %7 : vector<50x128xbf16> to vector<50x128xf32>
    %9 = arith.subf %6, %8 : vector<50x128xf32>
    %10 = arith.truncf %9 : vector<50x128xf32> to vector<50x128xbf16>
    %c0_4 = arith.constant 0 : index
    %c0_5 = arith.constant 0 : index
    %11 = vector.load %arg4[%c0_4, %c0_5] : memref<128x128xbf16, #tpu.memory_space<vmem>>, vector<128x128xbf16>
    %cst = arith.constant dense<0.000000e+00> : vector<50x128xf32>
    %12 = tpu.matmul %7, %11, %cst {dimension_numbers = #tpu.dot_dimension_numbers<[1], [0], [0], [1], [0, 0, 1, 1], [], []>} : vector<50x128xbf16>, vector<128x128xbf16>, vector<50x128xf32> -> vector<50x128xf32>
    %cst_6 = arith.constant dense<0.000000e+00> : vector<50x128xf32>
    %13 = tpu.matmul %10, %11, %cst_6 {dimension_numbers = #tpu.dot_dimension_numbers<[1], [0], [0], [1], [0, 0, 1, 1], [], []>} : vector<50x128xbf16>, vector<128x128xbf16>, vector<50x128xf32> -> vector<50x128xf32>
    %14 = arith.addf %12, %13 : vector<50x128xf32>
    %15 = math.sqrt %14 : vector<50x128xf32>
    %c1_i32 = arith.constant 1 : i32
    %16 = arith.muli %arg0, %c1_i32 : i32
    %17 = arith.addi %16, %arg1 : i32
    %c50_i32 = arith.constant 50 : i32
    %18 = arith.muli %17, %c50_i32 : i32
    %c50_i32_7 = arith.constant 50 : i32
    %19 = arith.addi %18, %c50_i32_7 : i32
    %c50_i32_8 = arith.constant 50 : i32
    %20 = arith.cmpi sle, %19, %c50_i32_8 : i32
    %21 = arith.extui %20 : i1 to i32
    %c0_i32_9 = arith.constant 0 : i32
    %22 = arith.cmpi ne, %21, %c0_i32_9 : i32
    scf.if %22 {
      %c0_13 = arith.constant 0 : index
      %c0_14 = arith.constant 0 : index
      %c0_15 = arith.constant 0 : index
      %27 = vector.load %arg5[%c0_13, %c0_14, %c0_15] : memref<1x1x1xf32, #tpu.memory_space<vmem>>, vector<1x1x1xf32>
      %28 = vector.shape_cast %15 : vector<50x128xf32> to vector<1x50x128xf32>
      %cst_16 = arith.constant dense<0.000000e+00> : vector<1xf32>
      %29 = vector.multi_reduction <add>, %28, %cst_16 [1, 2] : vector<1x50x128xf32> to vector<1xf32>
      %30 = vector.shape_cast %29 : vector<1xf32> to vector<1x1x1xf32>
      %31 = vector.extract %30[0, 0, 0] : f32 from vector<1x1x1xf32>
      %32 = vector.broadcast %31 : f32 to vector<1x1x1xf32>
      %33 = arith.addf %27, %32 : vector<1x1x1xf32>
      %c0_17 = arith.constant 0 : index
      %c0_18 = arith.constant 0 : index
      %c0_19 = arith.constant 0 : index
      %34 = vector.load %arg5[%c0_17, %c0_18, %c0_19] : memref<1x1x1xf32, #tpu.memory_space<vmem>>, vector<1x1x1xf32>
      tpu.vector_store %arg5[%c0_17, %c0_18, %c0_19], %33 {strides = array<i32>} : memref<1x1x1xf32, #tpu.memory_space<vmem>>, vector<1x1x1xf32>,
    } else {
    }
    %c50_i32_10 = arith.constant 50 : i32
    %23 = arith.addi %18, %c50_i32_10 : i32
    %c50_i32_11 = arith.constant 50 : i32
    %24 = arith.cmpi sgt, %23, %c50_i32_11 : i32
    %25 = arith.extui %24 : i1 to i32
    %c0_i32_12 = arith.constant 0 : i32
    %26 = arith.cmpi ne, %25, %c0_i32_12 : i32
    scf.if %26 {
      %27 = tpu.iota {dimensions = array<i32: 0>} : vector<50x128xi32>
      %28 = vector.broadcast %18 : i32 to vector<50x128xi32>
      %29 = arith.addi %28, %27 : vector<50x128xi32>
      %c50_i32_13 = arith.constant 50 : i32
      %30 = vector.broadcast %c50_i32_13 : i32 to vector<50x128xi32>
      %31 = arith.cmpi slt, %29, %30 : vector<50x128xi32>
      %c0_14 = arith.constant 0 : index
      %c0_15 = arith.constant 0 : index
      %c0_16 = arith.constant 0 : index
      %32 = vector.load %arg5[%c0_14, %c0_15, %c0_16] : memref<1x1x1xf32, #tpu.memory_space<vmem>>, vector<1x1x1xf32>
      %cst_17 = arith.constant 0.000000e+00 : f32
      %33 = vector.broadcast %cst_17 : f32 to vector<50x128xf32>
      %34 = arith.select %31, %15, %33 : vector<50x128xi1>, vector<50x128xf32>
      %35 = vector.shape_cast %34 : vector<50x128xf32> to vector<1x50x128xf32>
      %cst_18 = arith.constant dense<0.000000e+00> : vector<1xf32>
      %36 = vector.multi_reduction <add>, %35, %cst_18 [1, 2] : vector<1x50x128xf32> to vector<1xf32>
      %37 = vector.shape_cast %36 : vector<1xf32> to vector<1x1x1xf32>
      %38 = vector.extract %37[0, 0, 0] : f32 from vector<1x1x1xf32>
      %39 = vector.broadcast %38 : f32 to vector<1x1x1xf32>
      %40 = arith.addf %32, %39 : vector<1x1x1xf32>
      %c0_19 = arith.constant 0 : index
      %c0_20 = arith.constant 0 : index
      %c0_21 = arith.constant 0 : index
      %41 = vector.load %arg5[%c0_19, %c0_20, %c0_21] : memref<1x1x1xf32, #tpu.memory_space<vmem>>, vector<1x1x1xf32>
      tpu.vector_store %arg5[%c0_19, %c0_20, %c0_21], %40 {strides = array<i32>} : memref<1x1x1xf32, #tpu.memory_space<vmem>>, vector<1x1x1xf32>,
    } else {
    }
    return
  }
  func.func @transform_0(%arg0: i32, %arg1: i32) -> (i32, i32) {
    %c1_i32 = arith.constant 1 : i32
    %0 = arith.muli %arg0, %c1_i32 : i32
    %1 = arith.addi %0, %arg1 : i32
    %c0_i32 = arith.constant 0 : i32
    %2 = arith.minsi %1, %c0_i32 : i32
    %c0_i32_0 = arith.constant 0 : i32
    %c0_i32_1 = arith.constant 0 : i32
    return %2, %c0_i32_0 : i32, i32
  }
  func.func @transform_1(%arg0: i32, %arg1: i32) -> (i32, i32) {
    %c1_i32 = arith.constant 1 : i32
    %0 = arith.muli %arg0, %c1_i32 : i32
    %1 = arith.addi %0, %arg1 : i32
    %c0_i32 = arith.constant 0 : i32
    %2 = arith.minsi %1, %c0_i32 : i32
    %c0_i32_0 = arith.constant 0 : i32
    %c0_i32_1 = arith.constant 0 : i32
    return %2, %c0_i32_0 : i32, i32
  }
  func.func @transform_2(%arg0: i32, %arg1: i32) -> (i32, i32) {
    %c0_i32 = arith.constant 0 : i32
    %c0_i32_0 = arith.constant 0 : i32
    %c0_i32_1 = arith.constant 0 : i32
    return %c0_i32, %c0_i32_0 : i32, i32
  }
  func.func @transform_3(%arg0: i32, %arg1: i32) -> (i32, i32, i32) {
    %c0_i32 = arith.constant 0 : i32
    %c0_i32_0 = arith.constant 0 : i32
    %c0_i32_1 = arith.constant 0 : i32
    return %arg0, %c0_i32, %c0_i32_0 : i32, i32, i32
  }
}

</mosaic_0001>

<bundles_post_ra>
// kernel: tpu_custom_call.1
= control target key start
LH: loop header
LB: loop body
LE: loop exit
PB: predicated region body
PF: predicated region fallthrough
CT: control target
= control target key end

     0   :  { %8 = vsyncpa [#allocation3], 0  ;;  %s788_s0 = inlined_call_operand.hbm [shape: f32[50,128], index: 0, kind: input, shape index: {}]   ;;  %s789_s1 = inlined_call_operand.hbm [shape: f32[50,128], index: 1, kind: input, shape index: {}]   ;;  %s790_s2 = inlined_call_operand.hbm [shape: bf16[128,128], index: 2, kind: input, shape index: {}]   ;;  %s791_s3 = inlined_call_operand.hbm [shape: f32[1,1,1], index: 3, kind: output, shape index: {}]  }
   0x1   :  { %9 = vsyncpa [#allocation6], 0 }
   0x2   :  { %10 = vsyncpa [#allocation4], 0  ;;  %s693_s12 = smov [#allocation5]   ;;  %s694_s14 = smov [#allocation2]  }
   0x3   :  { %s40_s13 = sshll.u32 %s693_s12, 4  ;;  %s22_s15 = sshll.u32 %s694_s14, 4  ;;  %s41_s13 = int_to_ptr.vmem [resolvable:$true] %s40_s13  ;;  %s722_s15 = int_to_ptr.vmem [resolvable:$true] %s22_s15 }
   0x4   :  { %s599_s18 = scalar_lea.hbm %s789_s1, 896 }
   0x5   :  { %p600_p0 = scmp.ne.s32.totalorder %s789_s1, %s599_s18  ;;  %p603_p1 = scmp.lt.u32.totalorder %s599_s18, %s789_s1 }
   0x7   :  { %p605_p2 = pnand %p603_p1, %p600_p0 }
   0x9   :  { %608 = shalt.err (!%p605_p2)
}
   0xa   :  { %s609_s23 = scalar_lea.vmem %s41_s13, 896  ;;  %p614_p4 = scmp.lt.s32.totalorder %s41_s13, %s41_s13 }
   0xb   :  { %p610_p3 = scmp.ne.s32.totalorder %s41_s13, %s609_s23  ;;  %p615_p5 = scmp.lt.s32.totalorder %s609_s23, %s609_s23 }
   0xd   :  { %p616_p6 = por %p615_p5, %p614_p4 }
   0xf   :  { %p617_p7 = pnand %p616_p6, %p610_p3 }
  0x11   :  { %620 = shalt.err (!%p617_p7)
}
  0x12   :  { %s695_s24 = smov 128   ;;  %s696_s25 = smov 8  }
  0x13   :  { %46 = dma.hbm_to_vmem [thread:$0]  %s789_s1, 896, %s41_s13, [#allocation6], %s695_s24, %s695_s24, %s696_s25  }
  0x14   :  { %s621_s30 = scalar_lea.hbm %s788_s0, 896 }
  0x15   :  { %p622_p8 = scmp.ne.s32.totalorder %s788_s0, %s621_s30  ;;  %p625_p9 = scmp.lt.u32.totalorder %s621_s30, %s788_s0 }
  0x17   :  { %p627_p10 = pnand %p625_p9, %p622_p8 }
  0x19   :  { %630 = shalt.err (!%p627_p10)
}
  0x1a   :  { %s631_s8 = scalar_lea.vmem %s722_s15, 896  ;;  %p636_p12 = scmp.lt.s32.totalorder %s722_s15, %s722_s15 }
  0x1b   :  { %p632_p11 = scmp.ne.s32.totalorder %s722_s15, %s631_s8  ;;  %p637_p13 = scmp.lt.s32.totalorder %s631_s8, %s631_s8 }
  0x1d   :  { %p638_p0 = por %p637_p13, %p636_p12 }
  0x1f   :  { %p639_p1 = pnand %p638_p0, %p632_p11 }
  0x21   :  { %642 = shalt.err (!%p639_p1)
}
  0x22   :  { %28 = dma.hbm_to_vmem [thread:$0]  %s788_s0, 896, %s722_s15, [#allocation3], %s695_s24, %s695_s24, %s696_s25  }
  0x23   :  { %s697_s10 = smov [#allocation7]   ;;  %s643_s14 = scalar_lea.hbm %s790_s2, 1024 }
  0x24   :  { %s52_s11 = sshll.u32 %s697_s10, 4  ;;  %p644_p2 = scmp.ne.s32.totalorder %s790_s2, %s643_s14  ;;  %s53_s11 = int_to_ptr.vmem [resolvable:$true] %s52_s11 }
  0x25   :  { %p647_p3 = scmp.lt.u32.totalorder %s643_s14, %s790_s2 }
  0x27   :  { %p649_p4 = pnand %p647_p3, %p644_p2 }
  0x29   :  { %652 = shalt.err (!%p649_p4)
}
  0x2a   :  { %s653_s20 = scalar_lea.vmem %s53_s11, 1024  ;;  %p658_p6 = scmp.lt.s32.totalorder %s53_s11, %s53_s11 }
  0x2b   :  { %p654_p5 = scmp.ne.s32.totalorder %s53_s11, %s653_s20  ;;  %p659_p7 = scmp.lt.s32.totalorder %s653_s20, %s653_s20 }
  0x2d   :  { %p660_p8 = por %p659_p7, %p658_p6 }
  0x2f   :  { %p661_p9 = pnand %p660_p8, %p654_p5 }
  0x31   :  { %664 = shalt.err (!%p661_p9)
}
  0x32   :  { %s698_s0 = smov 64   ;;  %s699_s15 = smov 4  }
  0x33   :  { %58 = dma.hbm_to_vmem [thread:$0]  %s790_s2, 1024, %s53_s11, [#allocation6], %s698_s0, %s698_s0, %s699_s15  }
  0x34   :  { %687 = dma.done.wait [#allocation3], 896  }
  0x35   :  { %688 = vsyncadd [#allocation3], 4294966400 }
  0x36   :  { %689 = dma.done.wait [#allocation6], 1920  }
  0x37   :  { %690 = vsyncadd [#allocation6], 4294965376  ;;  %v577_v0 = vld [vmem:[#allocation7] sm:$0xff]   ;;  %v578_v1 = vld [vmem:[#allocation7 + $0x8] sm:$0xff]   ;;  %vm387_vm7 = vcmask 1041408   ;;  %vm81_vm15 = vcmask 0  }
  0x38   :  { %511 = vmatprep.subr.bf16.mxu1 %v577_v0  ;;  %535 = vmatprep.subr.bf16.mxu0 %v577_v0  ;;  %v579_v2 = vld [vmem:[#allocation7 + $0x10] sm:$0xff]   ;;  %v580_v3 = vld [vmem:[#allocation7 + $0x18] sm:$0xff]   ;;  %v90_v6 = vld [vmem:[#allocation5] sm:$0xff]  ;;  %s701_s2 = smov [#allocation8]  }
  0x39   :  { %512 = vmatpush3.bf16.msra.mxu1 %v577_v0  ;;  %536 = vmatpush3.bf16.msra.mxu0 %v577_v0  ;;  %v83_v4 = vld [vmem:[#allocation2] sm:$0xff]  ;;  %v84_v5 = vld [vmem:[#allocation2 + $0x8] sm:$0xff]  ;;  %v85_v9 = vld [vmem:[#allocation2 + $0x10] sm:$0xff]  ;;  %s465_s23 = sshll.u32 %s701_s2, 4  ;;  %s466_s23 = int_to_ptr.vmem [resolvable:$true] %s465_s23 }
  0x3a   :  { %513 = vmatprep.subr.bf16.mxu1 %v578_v1  ;;  %537 = vmatprep.subr.bf16.mxu0 %v578_v1  ;;  %v91_v7 = vld [vmem:[#allocation5 + $0x8] sm:$0xff]  ;;  %v97_v8 = vsub.f32 %v83_v4, %v90_v6  ;;  %v86_v10 = vld [vmem:[#allocation2 + $0x18] sm:$0xff]  ;;  %v92_v12 = vld [vmem:[#allocation5 + $0x10] sm:$0xff]  ;;  %s665_s25 = scalar_lea.vmem %s466_s23, 16  ;;  %s669_s26 = scalar_lea.vmem %s466_s23, 32 }
  0x3b   :  { %v98_v11 = vsub.f32 %v84_v5, %v91_v7  ;;  %v93_v13 = vld [vmem:[#allocation5 + $0x18] sm:$0xff]  ;;  %v87_v14 = vld [vmem:[#allocation2 + $0x20] sm:$0xff]  ;;  %v99_v16 = vsub.f32 %v85_v9, %v92_v12  ;;  %v88_v18 = vld [vmem:[#allocation2 + $0x28] sm:$0xff]  ;;  %p666_p10 = scmp.ne.s32.totalorder %s466_s23, %s665_s25  ;;  %p670_p11 = scmp.lt.s32.totalorder %s466_s23, %s466_s23 }
  0x3c   :  { %v104_v15 = vmul.f32 %v97_v8, %v97_v8  ;;  %v100_v17 = vsub.f32 %v86_v10, %v93_v13  ;;  %v94_v19 = vld [vmem:[#allocation5 + $0x20] sm:$0xff]  ;;  %v95_v20 = vld [vmem:[#allocation5 + $0x28] sm:$0xff]  ;;  %v581_v21 = vld [vmem:[#allocation7 + $0x20] sm:$0xff]   ;;  %p671_p12 = scmp.lt.s32.totalorder %s669_s26, %s665_s25 }
  0x3d   :  { %514 = vmatpush3.bf16.msra.mxu1 %v578_v1  ;;  %538 = vmatpush3.bf16.msra.mxu0 %v578_v1  ;;  %v105_v22 = vmul.f32 %v98_v11, %v98_v11  ;;  %v101_v23 = vsub.f32 %v87_v14, %v94_v19  ;;  %v102_v24 = vsub.f32 %v88_v18, %v95_v20  ;;  %v89_v30 = vld [vmem:[#allocation2 + $0x30] sm:$0x3]  ;;  %v96_v31 = vld [vmem:[#allocation5 + $0x30] sm:$0x3]  ;;  %v582_v32 = vld [vmem:[#allocation7 + $0x28] sm:$0xff]  }
  0x3e   :  { %515 = vmatprep.subr.bf16.mxu1 %v579_v2  ;;  %539 = vmatprep.subr.bf16.mxu0 %v579_v2  ;;  %v106_v26 = vmul.f32 %v99_v16, %v99_v16  ;;  %v107_v27 = vmul.f32 %v100_v17, %v100_v17  ;;  %v103_v38 = vsub.f32 %v89_v30, %v96_v31  ;;  %v583_v40 = vld [vmem:[#allocation7 + $0x30] sm:$0xff]   ;;  %v584_v47 = vld [vmem:[#allocation7 + $0x38] sm:$0xff]   ;;  %p672_p13 = por %p671_p12, %p670_p11 }
  0x3f   :  { %v111_v25 = vpack.c.bf16 %v105_v22, %v104_v15  ;;  %v108_v28 = vmul.f32 %v101_v23, %v101_v23  ;;  %v109_v29 = vmul.f32 %v102_v24, %v102_v24 }
  0x40   :  { %v112_v37 = vpack.c.bf16 %v107_v27, %v106_v26  ;;  %v110_v44 = vmul.f32 %v103_v38, %v103_v38  ;;  %p673_p0 = pnand %p672_p13, %p666_p10 }
  0x41   :  { %516 = vmatpush3.bf16.msra.mxu1 %v579_v2  ;;  %540 = vmatpush3.bf16.msra.mxu0 %v579_v2  ;;  %v115_v33 = vunpack.c.l.bf16 %v111_v25  ;;  %v116_v34 = vunpack.c.h.bf16 %v111_v25  ;;  %v113_v39 = vpack.c.bf16 %v109_v29, %v108_v28 }
  0x42   :  { %517 = vmatprep.subr.bf16.mxu1 %v580_v3  ;;  %541 = vmatprep.subr.bf16.mxu0 %v580_v3  ;;  %v117_v42 = vunpack.c.l.bf16 %v112_v37  ;;  %v118_v43 = vunpack.c.h.bf16 %v112_v37  ;;  %v114_v50 = vpack.c.bf16 %v110_v44, %v110_v44 }
  0x43   :  { %551 = vmatprep.mubr.bf16.mxu0 %v111_v25  ;;  %v122_v35 = vsub.f32 %v104_v15, %v115_v33  ;;  %v123_v36 = vsub.f32 %v105_v22, %v116_v34  ;;  %v119_v45 = vunpack.c.l.bf16 %v113_v39  ;;  %v120_v46 = vunpack.c.h.bf16 %v113_v39 }
  0x44   :  { %v124_v48 = vsub.f32 %v106_v26, %v117_v42  ;;  %v125_v49 = vsub.f32 %v107_v27, %v118_v43  ;;  %v121_v54 = vunpack.c.l.bf16 %v114_v50 }
  0x45   :  { %518 = vmatpush3.bf16.msra.mxu1 %v580_v3  ;;  %542 = vmatpush3.bf16.msra.mxu0 %v580_v3  ;;  %v129_v41 = vpack.c.bf16 %v123_v36, %v122_v35  ;;  %v126_v51 = vsub.f32 %v108_v28, %v119_v45  ;;  %v127_v52 = vsub.f32 %v109_v29, %v120_v46 }
  0x46   :  { %519 = vmatprep.subr.bf16.mxu1 %v581_v21  ;;  %543 = vmatprep.subr.bf16.mxu0 %v581_v21  ;;  %v130_v53 = vpack.c.bf16 %v125_v49, %v124_v48  ;;  %v128_v56 = vsub.f32 %v110_v44, %v121_v54 }
  0x47   :  { %527 = vmatprep.mubr.bf16.mxu1 %v129_v41  ;;  %v131_v55 = vpack.c.bf16 %v127_v52, %v126_v51 }
  0x48   :  { %v132_v57 = vpack.c.bf16 %v128_v56, %v128_v56 }
  0x49   :  { %520 = vmatpush3.bf16.msra.mxu1 %v581_v21  ;;  %544 = vmatpush3.bf16.msra.mxu0 %v581_v21 }
  0x4a   :  { %521 = vmatprep.subr.bf16.mxu1 %v582_v32  ;;  %545 = vmatprep.subr.bf16.mxu0 %v582_v32 }
  0x4d   :  { %522 = vmatpush3.bf16.msra.mxu1 %v582_v32  ;;  %546 = vmatpush3.bf16.msra.mxu0 %v582_v32 }
  0x4e   :  { %523 = vmatprep.subr.bf16.mxu1 %v583_v40  ;;  %547 = vmatprep.subr.bf16.mxu0 %v583_v40 }
  0x51   :  { %524 = vmatpush3.bf16.msra.mxu1 %v583_v40  ;;  %548 = vmatpush3.bf16.msra.mxu0 %v583_v40 }
  0x52   :  { %525 = vmatprep.subr.bf16.mxu1 %v584_v47  ;;  %549 = vmatprep.subr.bf16.mxu0 %v584_v47 }
  0x55   :  { %526 = vmatpush3.bf16.msra.mxu1 %v584_v47  ;;  %550 = vmatpush3.bf16.msra.mxu0 %v584_v47 }
  0x58   :  { %528 = vmatmul.mubr.bf16.vlgmr.msra.gmra.mrb[0].mxu1 %v130_v53  ;;  %552 = vmatmul.mubr.bf16.vlgmr.msra.gmra.mrb[0].mxu0 %v112_v37 }
  0x59   :  { %531 = vmatprep.mubr.bf16.mxu1 %v131_v55  ;;  %555 = vmatprep.mubr.bf16.mxu0 %v113_v39 }
  0x60   :  { %532 = vmatmul.mubr.bf16.gmra.mrb[4].mxu1 %v132_v57  ;;  %556 = vmatmul.mubr.bf16.gmra.mrb[4].mxu0 %v114_v50 }
 0x12b   :  { %v529_v58 = vpop.f32.mrb[0].mxu1  ;;  %v553_v59 = vpop.f32.mrb[0].mxu0 }
 0x12c   :  { %v304_v60 = vadd.f32 %v553_v59, %v529_v58  ;;  %v231_v61 = vpop.f32.mrb[1].mxu1  ;;  %v295_v62 = vpop.f32.mrb[1].mxu0  ;;  %v700_v59 = vmov 0.0  }
 0x12d   :  { %v296_v63 = vadd.f32 %v295_v62, %v231_v61  ;;  %v530_v0 = vpop.f32.mrb[2].mxu1  ;;  %v554_v1 = vpop.f32.mrb[2].mxu0  ;;  %82 = vst.msk [vmem:[#allocation8] sm:$0x1] %vm81_vm15, %v700_v59 }
 0x12e   :  { %585 = vrsqrt.f32 %v304_v60  ;;  %v307_v2 = vadd.f32 %v554_v1, %v530_v0  ;;  %v234_v3 = vpop.f32.mrb[3].mxu1  ;;  %v298_v4 = vpop.f32.mrb[3].mxu0  ;;  %vm341_vm2 = vcmp.eq.f32.partialorder %v304_v60, inf  ;;  %v344_v32 = vand.u32 2147483648, %v304_v60 }
 0x12f   :  { %587 = vrsqrt.f32 %v296_v63  ;;  %v299_v5 = vadd.f32 %v298_v4, %v234_v3  ;;  %vm327_vm0 = vcmp.eq.f32.partialorder %v296_v63, inf  ;;  %v330_v26 = vand.u32 2147483648, %v296_v63 }
 0x130   :  { %589 = vrsqrt.f32 %v307_v2  ;;  %vm329_vm3 = vcmp.eq.f32.partialorder %v296_v63, 0.0  ;;  %vm348_vm5 = vcmp.eq.f32.partialorder %v307_v2, inf  ;;  %vm343_vm6 = vcmp.eq.f32.partialorder %v304_v60, 0.0 }
 0x131   :  { %591 = vrsqrt.f32 %v299_v5  ;;  %vm334_vm1 = vcmp.eq.f32.partialorder %v299_v5, inf  ;;  %v337_v27 = vand.u32 2147483648, %v299_v5  ;;  %vm336_vm4 = vcmp.eq.f32.partialorder %v299_v5, 0.0 }
 0x132   :  { %vm350_vm8 = vcmp.eq.f32.partialorder %v307_v2, 0.0  ;;  %v351_v38 = vand.u32 2147483648, %v307_v2 }
 0x133   :  { %v533_v6 = vpop.f32.mrb[4].mxu1  ;;  %v557_v7 = vpop.f32.mrb[4].mxu0 }
 0x134   :  { %v765_v8 = vadd.f32 %v557_v7, %v533_v6  ;;  %v247_v9 = vpop.f32.mrb[5].mxu1  ;;  %v311_v10 = vpop.f32.mrb[5].mxu0  ;;  %v381_v3 = vld [vmem:[#allocation8] sm:$0x1] }
 0x135   :  { %v312_v11 = vadd.f32 %v311_v10, %v247_v9  ;;  %v534_v12 = vpop.f32.mrb[6].mxu1  ;;  %v558_v13 = vpop.f32.mrb[6].mxu0 }
 0x136   :  { %593 = vrsqrt.f32 %v765_v8  ;;  %v250_v14 = vpop.f32.mrb[7].mxu1  ;;  %v314_v15 = vpop.f32.mrb[7].mxu0  ;;  %vm369_vm9 = vcmp.eq.f32.partialorder %v765_v8, inf  ;;  %v372_v41 = vand.u32 2147483648, %v765_v8  ;;  %vm371_vm13 = vcmp.eq.f32.partialorder %v765_v8, 0.0 }
 0x137   :  { %595 = vrsqrt.f32 %v312_v11  ;;  %v315_v16 = vadd.f32 %v314_v15, %v250_v14  ;;  %vm355_vm10 = vcmp.eq.f32.partialorder %v312_v11, inf  ;;  %v358_v45 = vand.u32 2147483648, %v312_v11 }
 0x138   :  { %v586_v17 = vpop.eup %585  ;;  %vm357_vm11 = vcmp.eq.f32.partialorder %v312_v11, 0.0 }
 0x139   :  { %v588_v18 = vpop.eup %587  ;;  %597 = vrsqrt.f32 %v315_v16  ;;  %v340_v21 = vmul.f32 %v586_v17, %v304_v60  ;;  %vm362_vm12 = vcmp.eq.f32.partialorder %v315_v16, inf  ;;  %v365_v51 = vand.u32 2147483648, %v315_v16 }
 0x13a   :  { %v590_v19 = vpop.eup %589  ;;  %v326_v20 = vmul.f32 %v588_v18, %v296_v63  ;;  %vm364_vm14 = vcmp.eq.f32.partialorder %v315_v16, 0.0 }
 0x13b   :  { %v592_v22 = vpop.eup %591  ;;  %v347_v25 = vmul.f32 %v590_v19, %v307_v2  ;;  %v342_v29 = vsel %vm341_vm2, %v304_v60, %v340_v21 }
 0x13c   :  { %v328_v23 = vsel %vm327_vm0, %v296_v63, %v326_v20  ;;  %v333_v24 = vmul.f32 %v592_v22, %v299_v5  ;;  %v345_v37 = vsel %vm343_vm6, %v344_v32, %v342_v29 }
 0x13d   :  { %v331_v30 = vsel %vm329_vm3, %v330_v26, %v328_v23  ;;  %v349_v34 = vsel %vm348_vm5, %v307_v2, %v347_v25 }
 0x13e   :  { %v335_v28 = vsel %vm334_vm1, %v299_v5, %v333_v24  ;;  %v352_v44 = vsel %vm350_vm8, %v351_v38, %v349_v34 }
 0x13f   :  { %v338_v31 = vsel %vm336_vm4, %v337_v27, %v335_v28 }
 0x140   :  { %v594_v33 = vpop.eup %593  ;;  %v382_v35 = vadd.f32 %v338_v31, %v331_v30 }
 0x141   :  { %v596_v36 = vpop.eup %595  ;;  %v368_v39 = vmul.f32 %v594_v33, %v765_v8 }
 0x142   :  { %v354_v40 = vmul.f32 %v596_v36, %v312_v11  ;;  %v383_v42 = vadd.f32 %v382_v35, %v345_v37 }
 0x143   :  { %v598_v43 = vpop.eup %597  ;;  %v370_v46 = vsel %vm369_vm9, %v765_v8, %v368_v39 }
 0x144   :  { %v356_v47 = vsel %vm355_vm10, %v312_v11, %v354_v40  ;;  %v361_v48 = vmul.f32 %v598_v43, %v315_v16  ;;  %v384_v49 = vadd.f32 %v383_v42, %v352_v44  ;;  %v373_v53 = vsel %vm371_vm13, %v372_v41, %v370_v46 }
 0x145   :  { %v359_v50 = vsel %vm357_vm11, %v358_v45, %v356_v47  ;;  %v388_v57 = vsel %vm387_vm7, %v373_v53, 0.0 }
 0x146   :  { %v363_v52 = vsel %vm362_vm12, %v315_v16, %v361_v48  ;;  %v385_v54 = vadd.f32 %v384_v49, %v359_v50 }
 0x147   :  { %v366_v55 = vsel %vm364_vm14, %v365_v51, %v363_v52 }
 0x148   :  { %v386_v56 = vadd.f32 %v385_v54, %v366_v55 }
 0x14a   :  { %v389_v58 = vadd.f32 %v388_v57, %v386_v56 }
 0x14c   :  { %390 = vadd.xlane.f32.xlu0 %v389_v58 }
 0x1d9   :  { %v391_v60 = vpop.xlane.xlu0 %390 }
 0x1da   :  { %v392_v61 = vrot.slane %v391_v60, 4 }
 0x1dc   :  { %v393_v62 = vadd.f32 %v392_v61, %v391_v60 }
 0x1de   :  { %v394_v63 = vrot.slane %v393_v62, 2 }
 0x1e0   :  { %v395_v0 = vadd.f32 %v394_v63, %v393_v62 }
 0x1e2   :  { %v396_v1 = vrot.slane %v395_v0, 1 }
 0x1e4   :  { %v397_v2 = vadd.f32 %v396_v1, %v395_v0 }
 0x1e6   :  { %566 = vpush %v397_v2 }
 0x217   :  { %s567_s24 = spop %566 }
 0x218   :  { %v399_v4 = vstv %s567_s24 }
 0x219   :  { %v400_v5 = vadd.f32 %v399_v4, %v381_v3 }
 0x21b   :  { %402 = vst.msk [vmem:[#allocation8] sm:$0x1] %vm81_vm15, %v400_v5 }
 0x21c   :  { %676 = shalt.err (!%p673_p0)
}
 0x21d   :  { %s677_s29 = scalar_lea.hbm %s791_s3, 16 }
 0x21e   :  { %p678_p1 = scmp.ne.s32.totalorder %s791_s3, %s677_s29  ;;  %p681_p2 = scmp.lt.u32.totalorder %s677_s29, %s791_s3 }
 0x220   :  { %p683_p3 = pnand %p681_p2, %p678_p1 }
 0x222   :  { %686 = shalt.err (!%p683_p3)
}
 0x223   :  { %468 = dma.vmem_to_hbm [thread:$0]  %s466_s23, 16, %s791_s3, [#allocation4]  }
 0x224   :  { %691 = dma.done.wait [#allocation4], 16  }
 0x225   :  { %692 = vsyncadd [#allocation4], 4294967280 }
 0x226   :  { %472 = vsyncpa [#allocation3], 1 }
 0x227   :  { %473 = vsyncpa [#allocation6], 1 }
 0x228   :  { %474 = vsyncpa [#allocation4], 1 }

</bundles_post_ra>
